<compile_context>
chip_gen: v5e
topology: v5e:2x2
jax: 0.10.0
libtpu: 0.0.40
codegen_flags: <defaults>
</compile_context>

<pallas_src>
import functools

import jax
import jax.numpy as jnp
from jax.experimental import pallas as pl
from jax.experimental.pallas import tpu as pltpu


def _shave_kernel(x_ref, o_ref, *, s):
    # x_ref: (C, H, W) VMEM tile for one batch element (batch dim squeezed).
    # o_ref: (C, H-2s, W-2s) VMEM tile.
    c, h, w = x_ref.shape
    o_ref[...] = x_ref[:, s:h - s, s:w - s]


def shave_block_forward(x, *, s):
    """Equivalent of PyTorch shave_block: x[:, :, s:-s, s:-s] (NCHW)."""
    n, c, h, w = x.shape
    ho, wo = h - 2 * s, w - 2 * s
    assert ho > 0 and wo > 0, "shave amount too large for input"

    kernel = functools.partial(_shave_kernel, s=s)
    return pl.pallas_call(
        kernel,
        out_shape=jax.ShapeDtypeStruct((n, c, ho, wo), x.dtype),
        grid=(n,),
        in_specs=[pl.BlockSpec((None, c, h, w), lambda i: (i, 0, 0, 0))],
        out_specs=pl.BlockSpec((None, c, ho, wo), lambda i: (i, 0, 0, 0)),
        compiler_params=pltpu.CompilerParams(
            dimension_semantics=("parallel",)),
    )(x)


if __name__ == "__main__":
    # Small deterministic problem matching the module: NCHW input, shave s=2.
    N, C, H, W = 2, 4, 16, 16
    S = 2

    key = jax.random.PRNGKey(0)
    x = jax.random.normal(key, (N, C, H, W), jnp.float32)

    fwd = jax.jit(functools.partial(shave_block_forward, s=S))
    out = jax.block_until_ready(fwd(x))

    ref = x[:, :, S:-S, S:-S]
    assert out.shape == (N, C, H - 2 * S, W - 2 * S), out.shape
    assert bool(jnp.array_equal(out, ref)), "mismatch vs reference"

    print("KERNEL_OK")
</pallas_src>

<mosaic_0001>
module attributes {stable_mosaic.version = 11 : i64} {
  func.func @_shave_kernel(%arg0: i32, %arg1: memref<1x4x16x16xf32, #tpu.memory_space<vmem>>, %arg2: memref<1x4x12x12xf32, #tpu.memory_space<vmem>>) attributes {dimension_semantics = [#tpu.dimension_semantics<parallel>], iteration_bounds = array<i64: 2>, scalar_prefetch = 0 : i64, scratch_operands = 0 : i64, tpu.core_type = #tpu.core_type<tc>, window_params = [{transform_indices = @transform_0, window_bounds = array<i64: 1, 4, 16, 16>}, {transform_indices = @transform_1, window_bounds = array<i64: 1, 4, 12, 12>}]} {
    %c0 = arith.constant 0 : index
    %c0_0 = arith.constant 0 : index
    %c2 = arith.constant 2 : index
    %c2_1 = arith.constant 2 : index
    %0 = vector.load %arg1[%c0, %c0_0, %c2, %c2_1] : memref<1x4x16x16xf32, #tpu.memory_space<vmem>>, vector<1x4x12x12xf32>
    %1 = vector.shape_cast %0 : vector<1x4x12x12xf32> to vector<4x12x12xf32>
    %c0_2 = arith.constant 0 : index
    %c0_3 = arith.constant 0 : index
    %c0_4 = arith.constant 0 : index
    %c0_5 = arith.constant 0 : index
    %2 = vector.load %arg2[%c0_2, %c0_3, %c0_4, %c0_5] : memref<1x4x12x12xf32, #tpu.memory_space<vmem>>, vector<1x4x12x12xf32>
    %3 = vector.shape_cast %2 : vector<1x4x12x12xf32> to vector<4x12x12xf32>
    %4 = vector.shape_cast %1 : vector<4x12x12xf32> to vector<1x4x12x12xf32>
    tpu.vector_store %arg2[%c0_2, %c0_3, %c0_4, %c0_5], %4 {strides = array<i32>} : memref<1x4x12x12xf32, #tpu.memory_space<vmem>>, vector<1x4x12x12xf32>,
    return
  }
  func.func @transform_0(%arg0: i32) -> (i32, i32, i32, i32) {
    %c0_i32 = arith.constant 0 : i32
    %c0_i32_0 = arith.constant 0 : i32
    %c0_i32_1 = arith.constant 0 : i32
    %c0_i32_2 = arith.constant 0 : i32
    return %arg0, %c0_i32, %c0_i32_0, %c0_i32_1 : i32, i32, i32, i32
  }
  func.func @transform_1(%arg0: i32) -> (i32, i32, i32, i32) {
    %c0_i32 = arith.constant 0 : i32
    %c0_i32_0 = arith.constant 0 : i32
    %c0_i32_1 = arith.constant 0 : i32
    %c0_i32_2 = arith.constant 0 : i32
    return %arg0, %c0_i32, %c0_i32_0, %c0_i32_1 : i32, i32, i32, i32
  }
}

</mosaic_0001>

<bundles_post_ra>
// kernel: shave_block_forward.1
= control target key start
LH: loop header
LB: loop body
LE: loop exit
PB: predicated region body
PF: predicated region fallthrough
CT: control target
= control target key end

     0   :  { %6 = vsyncpa [#allocation3], 0  ;;  %s487_s0 = inlined_call_operand.hbm [shape: f32[2,4,16,16], index: 0, kind: input, shape index: {}]   ;;  %s488_s1 = inlined_call_operand.vmem [shape: f32[2,4,12,12], index: 1, kind: output, shape index: {}]  }
   0x1   :  { %8 = vsyncpa [#allocation3 + $0x1], 0  ;;  %s391_s6 = smov 0   ;;  %s393_s7 = smov 0  }
   0x2   :  { %s395_s8 = smov 0   ;;  %s397_s9 = smov 0  }
   0x3 LB: > { %s410_s10 = sadd.s32 4294967295, %s376_s9   ;;  %s413_s11 = sadd.s32 1, %s376_s9   ;;  %s376_s9 = sphi %s397_s9, %s495_s9   ;;  %s372_s8 = sphi %s395_s8, %s494_s8   ;;  %s368_s7 = sphi %s393_s7, %s493_s7   ;;  %s364_s6 = sphi %s391_s6, %s492_s6  }
   0x4   : > { %s18_s12 = ssub.s32 %s376_s9, %s413_s11  ;;  %s21_s13 = sadd.s32 1, %s372_s8 }
   0x5   : > { %p19_p0 = scmp.eq.s32.totalorder %s18_s12, 0  ;;  %p28_p1 = scmp.ne.s32.totalorder %s372_s8, %s368_s7 }
   0x6   : > { %p29_p2 = scmp.eq.s32.totalorder %s376_s9, 0  ;;  %p34_p3 = scmp.ne.s32.totalorder %s368_s7, %s364_s6 }
   0x7   : > { %s423_s14 = scalar_select %p19_p0, %s372_s8, %s21_s13  }
   0x8   : > { %p425_p4 = por %p29_p2, %p28_p1  ;;  %p35_p5 = scmp.eq.s32.totalorder %s410_s10, 0 }
   0x9   : > { %p276_p6 = scmp.lt.s32.totalorder %s376_s9, 2  ;;  %s84_s17 = sand.u32 1, %s372_s8  }
   0xa   : > { %p431_p7 = por %p35_p5, %p34_p3  ;;  %s259_s18 = sshll.u32 %s84_s17, 6 }
   0xb   : > { %s268_s19 = sshll.u32 %s376_s9, 6  ;;  %s88_s23 = scalar_lea.vmem [#allocation2], %s259_s18 }
   0xc   : > { %s93_s22 = scalar_lea.hbm %s487_s0, %s268_s19  ;;  %s96_s24 = sshll.u32 %s88_s23, 4  ;;  %s97_s24 = int_to_ptr.vmem [resolvable:$true] %s96_s24 }
   0xd   : > { %s94_s25 = sshll.u32 %s93_s22, 4  ;;  %p442_p8 = pnand %p276_p6, %p425_p4  ;;  %s95_s25 = int_to_ptr.hbm [resolvable:$true] %s94_s25 }
   0xe   : > { %p262_p9 = scmp.ge.s32.totalorder %s376_s9, 1  ;;  %s85_s27 = scalar_lea.sflag [#allocation3], %s84_s17 }
   0xf   : > { %s312_s28 = sshra.s32 %s95_s25, 4  ;;  %p316_p11 = pneg %p442_p8  ;;  %s313_s28 = int_to_ptr.hbm [resolvable:$true] %s312_s28 }
  0x10   : > { %s314_s29 = scalar_lea.hbm %s313_s28, 64  ;;  %s319_s3 = scalar_lea.hbm %s487_s0, 128 }
  0x11   : > { %p315_p10 = scmp.ne.s32.totalorder %s313_s28, %s314_s29  ;;  %p320_p0 = scmp.lt.s32.totalorder %s313_s28, %s487_s0 }
  0x12   : > { %p321_p1 = scmp.lt.s32.totalorder %s319_s3, %s314_s29 }
  0x13   : > { %p317_p12 = pnand %p316_p11, %p315_p10 }
  0x14   : > { %p322_p2 = por %p321_p1, %p320_p0 }
  0x15   : > { %p318_p13 = pneg %p317_p12 }
  0x17   : > { %p323_p3 = pnand %p322_p2, %p318_p13 }
  0x19   : > { %326 = shalt.err (!%p323_p3)
}
  0x1a   : > { %s378_s6 = smov 128   ;;  %s379_s12 = smov 8  }
  0x1b   : > { %275 = dma.hbm_to_vmem [thread:$0]  (!%p442_p8), %s95_s25, 1024, %s97_s24, %s85_s27, %s378_s6, %s378_s6, %s379_s12  }
  0x1c   : > { %p104_p4 = scmp.lt.s32.totalorder %s376_s9, 3 }
  0x1e   : > { %p105_p5 = pnand %p262_p9, %p104_p4 }
  0x1f   : > { %s110_s13 = sand.u32 (!%p105_p5), 1, %s368_s7  }
  0x20   : > { %108 = sbr.rel (%p105_p5) target bundleno = 172 (0xac), region = 24  ;;  %s263_s15 = sshll.u32 (!%p105_p5), %s110_s13, 6 }
  0x21   : > { %s111_s17 = scalar_lea.sflag (!%p105_p5), [#allocation3], %s110_s13  ;;  %s114_s18 = scalar_lea.vmem (!%p105_p5), [#allocation2], %s263_s15 }
  0x25   : > { %359 = dma.done.wait (%p431_p7), %s111_s17, 1024  }
  0x26   : > { %361 = vsyncadd (%p431_p7), %s111_s17, 4294966272  ;;  %v141_v0 = vld [vmem:[%s114_s18 + $0x12] sm:$0xff]  ;;  %v139_v1 = vld [vmem:[%s114_s18 + $0x2] sm:$0xff]  ;;  %s380_s19 = smov 126   ;;  %p134_p6 = scmp.lt.s32.totalorder %s410_s10, 1  ;;  %vm179_vm0 = vcmask 97280  }
  0x27   : > { %159 = vrot.lane.b32.xlu1 %v141_v0, %s380_s19  ;;  %155 = vrot.lane.b32.xlu0 %v139_v1, %s380_s19  ;;  %v143_v2 = vld [vmem:[%s114_s18 + $0x22] sm:$0xff]  ;;  %v142_v3 = vld [vmem:[%s114_s18 + $0x1a] sm:$0xf]  ;;  %vm181_vm1 = vcmask 93184  }
  0x28   : > { %163 = vrot.lane.b32.xlu2 %v143_v2, %s380_s19  ;;  %v140_v4 = vld [vmem:[%s114_s18 + $0xa] sm:$0xf]  ;;  %v146_v6 = vld [vmem:[%s114_s18 + $0x3a] sm:$0xf]  ;;  %v145_v7 = vld [vmem:[%s114_s18 + $0x32] sm:$0xff]  ;;  %s497_s10 = smov (!%p134_p6, %s410_s10), 1 }
  0x29   : > { %v144_v5 = vld [vmem:[%s114_s18 + $0x2a] sm:$0xf]  ;;  %s269_s9 = sshll.u32 %s497_s10, 6 }
  0x2a   : > { %s138_s21 = scalar_lea.vmem %s488_s1, %s269_s9 }
  0x2f   : > { %161 = vrot.lane.b32.xlu1 %v142_v3, %s380_s19  ;;  %157 = vrot.lane.b32.xlu0 %v140_v4, %s380_s19 }
  0x30   : > { %165 = vrot.lane.b32.xlu2 %v144_v5, %s380_s19 }
  0x37   : > { %169 = vrot.lane.b32.xlu1 %v146_v6, %s380_s19  ;;  %167 = vrot.lane.b32.xlu0 %v145_v7, %s380_s19 }
  0x82   : > { %v164_v8 = vpop.permute.xlu2 %163 }
  0x83   : > { %185 = vst.msk [vmem:[%s138_s21 + $0x20] sm:$0xff] %vm179_vm0, %v164_v8 }
  0x8a   : > { %v166_v9 = vpop.permute.xlu2 %165 }
  0x8b   : > { %186 = vst.msk [vmem:[%s138_s21 + $0x28] sm:$0xf] %vm181_vm1, %v166_v9 }
  0x99   : > { %v160_v10 = vpop.permute.xlu1 %159  ;;  %v156_v11 = vpop.permute.xlu0 %155 }
  0x9a   : > { %183 = vst.msk [vmem:[%s138_s21 + $0x10] sm:$0xff] %vm179_vm0, %v160_v10 }
  0x9b   : > { %180 = vst.msk [vmem:[%s138_s21] sm:$0xff] %vm179_vm0, %v156_v11 }
  0xa1   : > { %v162_v12 = vpop.permute.xlu1 %161  ;;  %v158_v13 = vpop.permute.xlu0 %157 }
  0xa2   : > { %184 = vst.msk [vmem:[%s138_s21 + $0x18] sm:$0xf] %vm181_vm1, %v162_v12 }
  0xa3   : > { %182 = vst.msk [vmem:[%s138_s21 + $0x8] sm:$0xf] %vm181_vm1, %v158_v13 }
  0xa9   : > { %v170_v14 = vpop.permute.xlu1 %169  ;;  %v168_v15 = vpop.permute.xlu0 %167 }
  0xaa   : > { %188 = vst.msk [vmem:[%s138_s21 + $0x38] sm:$0xf] %vm181_vm1, %v170_v14 }
  0xab   : > { %187 = vst.msk [vmem:[%s138_s21 + $0x30] sm:$0xff] %vm179_vm0, %v168_v15 }
  0xac PF: > { %p11_p7 = scmp.ge.s32.totalorder %s413_s11, 4   ;;  %s492_s6 = smov %s368_s7 }
  0xad   : > { %s493_s7 = smov %s372_s8  ;;  %s494_s8 = smov %s423_s14 }
  0xae   : > { %s495_s9 = smov %s413_s11  ;;  %13 = sbr.rel (!%p11_p7) target bundleno = 3 (0x3), region = 64 }
  0xb3   :  { %210 = vsyncpa [#allocation3], 1 }
  0xb4   :  { %212 = vsyncpa [#allocation3 + $0x1], 1 }

</bundles_post_ra>
